<compile_context>
chip_gen: v7x
topology: tpu7x:2x2x1
jax: 0.10.0
libtpu: 0.0.40
codegen_flags: <defaults>
</compile_context>

<pallas_src>
import jax
import jax.numpy as jnp
from jax.experimental import pallas as pl
from jax.experimental.pallas import tpu as pltpu

_LANES = 512          # lane-dense last dim (multiple of 128)
_MAX_TILE_ROWS = 512  # 512 x 512 x 4B = 1 MiB per f32 tile


def _pruner_scale_kernel(sg_ref, x_ref, o_ref):
    # sg_ref: (1,) scalar in SMEM; x_ref/o_ref: (TR, _LANES) tiles in VMEM.
    o_ref[...] = sg_ref[0] * x_ref[...]


def _sg_scalar(weight, m):
    """Scalar gate value, same fp32 math/association order as the PyTorch module."""
    w = weight[0]
    gate = 0.5 * w / jnp.abs(w) + 0.5            # NaN at w == 0, matching torch w/|w|
    saw = (m * w - jnp.floor(m * w)) / m
    return (saw + gate).reshape(1).astype(jnp.float32)


def pruner_forward(x, weight, m=100000.0):
    """x: [N, C, H, W] float32; weight: [1] float32. Returns sg(weight) * x."""
    orig_shape = x.shape
    total = x.size

    # Lane-dense 2-D slab: pad once so it reshapes exactly to [rows, _LANES]
    # with rows a multiple of the row-tile (itself a multiple of 8 sublanes).
    rows_needed = pl.cdiv(total, _LANES)
    tile_rows = min(_MAX_TILE_ROWS, ((rows_needed + 7) // 8) * 8)
    padded_rows = pl.cdiv(rows_needed, tile_rows) * tile_rows
    padded_total = padded_rows * _LANES

    flat = x.reshape(-1)
    if padded_total != total:
        flat = jnp.pad(flat, (0, padded_total - total))
    x2d = flat.reshape(padded_rows, _LANES)

    sg = _sg_scalar(weight, m)
    num_tiles = padded_rows // tile_rows

    out2d = pl.pallas_call(
        _pruner_scale_kernel,
        out_shape=jax.ShapeDtypeStruct(x2d.shape, x2d.dtype),
        grid=(num_tiles,),
        in_specs=[
            pl.BlockSpec(memory_space=pltpu.SMEM),                 # scalar sg
            pl.BlockSpec((tile_rows, _LANES), lambda i: (i, 0)),   # x tile
        ],
        out_specs=pl.BlockSpec((tile_rows, _LANES), lambda i: (i, 0)),
        compiler_params=pltpu.CompilerParams(
            dimension_semantics=("parallel",),
        ),
        cost_estimate=pl.CostEstimate(
            flops=total,
            transcendentals=0,
            bytes_accessed=2 * 4 * total,  # read + write f32
        ),
    )(sg, x2d)

    return out2d.reshape(-1)[:total].reshape(orig_shape)


if __name__ == "__main__":
    key = jax.random.PRNGKey(0)

    # Deterministic parameter init, matching Pruner.__init__ default init=0.1
    weight = jnp.array([0.1], dtype=jnp.float32)
    m = 100000.0

    # Small NCHW input consistent with conv-style usage of the pruner gate.
    x = jax.random.normal(key, (2, 4, 16, 16), dtype=jnp.float32)

    out = pruner_forward(x, weight, m=m)
    out = jax.block_until_ready(out)

    # Reference check in plain JAX (same math as the PyTorch module).
    gate = 0.5 * weight[0] / jnp.abs(weight[0]) + 0.5
    saw = (m * weight[0] - jnp.floor(m * weight[0])) / m
    ref = (saw + gate) * x
    assert out.shape == x.shape
    assert out.dtype == x.dtype
    assert jnp.allclose(out, ref, atol=1e-6), "mismatch vs reference"

    print("KERNEL_OK")
</pallas_src>

<mosaic_0001>
module attributes {stable_mosaic.version = 11 : i64} {
  func.func @_pruner_scale_kernel(%arg0: i32, %arg1: memref<1xf32, #tpu.memory_space<smem>>, %arg2: memref<8x512xf32, #tpu.memory_space<vmem>>, %arg3: memref<8x512xf32, #tpu.memory_space<vmem>>) attributes {dimension_semantics = [#tpu.dimension_semantics<parallel>], iteration_bounds = array<i64: 1>, scalar_prefetch = 0 : i64, scratch_operands = 0 : i64, tpu.core_type = #tpu.core_type<tc>, window_params = [{transform_indices = @transform_0, window_bounds = array<i64: 1>}, {transform_indices = @transform_1, window_bounds = array<i64: 8, 512>}, {transform_indices = @transform_2, window_bounds = array<i64: 8, 512>}]} {
    %c0 = arith.constant 0 : index
    %0 = memref.load %arg1[%c0] : memref<1xf32, #tpu.memory_space<smem>>
    %c0_0 = arith.constant 0 : index
    %c0_1 = arith.constant 0 : index
    %1 = vector.load %arg2[%c0_0, %c0_1] : memref<8x512xf32, #tpu.memory_space<vmem>>, vector<8x512xf32>
    %2 = vector.broadcast %0 : f32 to vector<8x512xf32>
    %3 = arith.mulf %2, %1 : vector<8x512xf32>
    %c0_2 = arith.constant 0 : index
    %c0_3 = arith.constant 0 : index
    %4 = vector.load %arg3[%c0_2, %c0_3] : memref<8x512xf32, #tpu.memory_space<vmem>>, vector<8x512xf32>
    tpu.vector_store %arg3[%c0_2, %c0_3], %3 {strides = array<i32>} : memref<8x512xf32, #tpu.memory_space<vmem>>, vector<8x512xf32>,
    return
  }
  func.func @transform_0(%arg0: i32) -> i32 {
    %c0_i32 = arith.constant 0 : i32
    %c0_i32_0 = arith.constant 0 : i32
    return %c0_i32 : i32
  }
  func.func @transform_1(%arg0: i32) -> (i32, i32) {
    %c0_i32 = arith.constant 0 : i32
    %c0_i32_0 = arith.constant 0 : i32
    return %arg0, %c0_i32 : i32, i32
  }
  func.func @transform_2(%arg0: i32) -> (i32, i32) {
    %c0_i32 = arith.constant 0 : i32
    %c0_i32_0 = arith.constant 0 : i32
    return %arg0, %c0_i32 : i32, i32
  }
}

</mosaic_0001>

<bundles_post_ra>
// kernel: tpu_custom_call.1
= control target key start
LH: loop header
LB: loop body
LE: loop exit
PB: predicated region body
PF: predicated region fallthrough
CT: control target
= control target key end

     0   :  { %8 = vsyncpa [#allocation4], 0  ;;  %s148_s0 = inlined_call_operand.<no memory space> [shape: f32[1], index: 0, kind: input, shape index: {}]   ;;  %s149_s1 = inlined_call_operand.hbm [shape: f32[8,512], index: 1, kind: input, shape index: {}]   ;;  %s150_s2 = inlined_call_operand.hbm [shape: f32[8,512], index: 2, kind: output, shape index: {}]  }
   0x1   :  { %9 = vsyncpa [#allocation5], 0  ;;  %s104_s9 = smov [#allocation3]   ;;  %s56_s13 = scalar_lea.hbm %s149_s1, 512 }
   0x2   :  { %s18_s10 = sshll.u32 %s104_s9, 4  ;;  %p57_p0 = scmp.ne.s32.totalorder %s149_s1, %s56_s13  ;;  %s19_s10 = int_to_ptr.vmem [resolvable:$true] %s18_s10 }
   0x3   :  { %p60_p1 = scmp.lt.u32.totalorder %s56_s13, %s149_s1 }
   0x5   :  { %p62_p2 = pnand %p60_p1, %p57_p0 }
   0x7   :  { %65 = shalt.err (!%p62_p2)
}
   0x8   :  { %s66_s18 = scalar_lea.vmem %s19_s10, 512  ;;  %p71_p4 = scmp.lt.s32.totalorder %s19_s10, %s19_s10 }
   0x9   :  { %p67_p3 = scmp.ne.s32.totalorder %s19_s10, %s66_s18  ;;  %p72_p5 = scmp.lt.s32.totalorder %s66_s18, %s66_s18 }
   0xb   :  { %p73_p6 = por %p72_p5, %p71_p4 }
   0xd   :  { %p74_p7 = pnand %p73_p6, %p67_p3 }
   0xf   :  { %77 = shalt.err (!%p74_p7)
}
  0x10   :  { %21 = dma.hbm_to_vmem [thread:$0]  %s149_s1, 512, %s19_s10, [#allocation4]  }
  0x11   :  { %100 = dma.done.wait [#allocation4], 512  }
  0x12   :  { %101 = vsyncadd [#allocation4], 4294966784  ;;  %v30_v0 = vstv %s148_s0  ;;  %s105_s23 = smov [#allocation6]   ;;  %v26_v1 = vld [vmem:[#allocation3] sm:$0xff]  ;;  %v27_v2 = vld [vmem:[#allocation3 + $0x8] sm:$0xff] }
  0x13   :  { %s45_s24 = sshll.u32 %s105_s23, 4  ;;  %v28_v3 = vld [vmem:[#allocation3 + $0x10] sm:$0xff]  ;;  %v31_v4 = vmul.f32 %v30_v0, %v26_v1  ;;  %v32_v5 = vmul.f32 %v30_v0, %v27_v2  ;;  %v29_v7 = vld [vmem:[#allocation3 + $0x18] sm:$0xff]  ;;  %s46_s24 = int_to_ptr.vmem [resolvable:$true] %s45_s24 }
  0x14   :  { %v33_v6 = vmul.f32 %v30_v0, %v28_v3  ;;  %v34_v8 = vmul.f32 %v30_v0, %v29_v7  ;;  %s78_s1 = scalar_lea.vmem %s46_s24, 512  ;;  %p83_p9 = scmp.lt.s32.totalorder %s46_s24, %s46_s24 }
  0x15   :  { %35 = vst [vmem:[#allocation6] sm:$0xff] %v31_v4  ;;  %36 = vst [vmem:[#allocation6 + $0x8] sm:$0xff] %v32_v5  ;;  %p79_p8 = scmp.ne.s32.totalorder %s46_s24, %s78_s1  ;;  %p84_p10 = scmp.lt.s32.totalorder %s78_s1, %s78_s1 }
  0x16   :  { %37 = vst [vmem:[#allocation6 + $0x10] sm:$0xff] %v33_v6  ;;  %38 = vst [vmem:[#allocation6 + $0x18] sm:$0xff] %v34_v8 }
  0x17   :  { %p85_p11 = por %p84_p10, %p83_p9 }
  0x19   :  { %p86_p12 = pnand %p85_p11, %p79_p8 }
  0x1b   :  { %89 = shalt.err (!%p86_p12)
}
  0x1c   :  { %s90_s26 = scalar_lea.hbm %s150_s2, 512 }
  0x1d   :  { %p91_p13 = scmp.ne.s32.totalorder %s150_s2, %s90_s26  ;;  %p94_p0 = scmp.lt.u32.totalorder %s90_s26, %s150_s2 }
  0x1f   :  { %p96_p1 = pnand %p94_p0, %p91_p13 }
  0x21   :  { %99 = shalt.err (!%p96_p1)
}
  0x22   :  { %48 = dma.vmem_to_hbm [thread:$0]  %s46_s24, 512, %s150_s2, [#allocation5]  }
  0x23   :  { %102 = dma.done.wait [#allocation5], 512  }
  0x24   :  { %103 = vsyncadd [#allocation5], 4294966784 }
  0x25   :  { %52 = vsyncpa [#allocation4], 1 }
  0x26   :  { %53 = vsyncpa [#allocation5], 1 }

</bundles_post_ra>
